<compile_context>
chip_gen: v7x
topology: tpu7x:2x2x1
jax: 0.10.0
libtpu: 0.0.40
codegen_flags: <defaults>
</compile_context>

<pallas_src>
import functools

import jax
import jax.numpy as jnp
from jax.experimental import pallas as pl
from jax.experimental.pallas import tpu as pltpu


def policy_kernel(xT_ref, w1_ref, b1_ref, wd_ref, bd_ref, o_ref):
    # xT: (4, TILE_B) f32    w1: (128, 4) f32    b1: (128, 1) f32
    # wd: (128, 1) f32 = (w2[1] - w2[0])^T       bd: (1, 1) f32 = b2[1] - b2[0]
    # o : (1, TILE_B) f32 = P(action = 0)
    x = xT_ref[...]
    w1 = w1_ref[...]

    # affine1 as K=4 rank-1 outer-product accumulations on the VPU; the bias
    # is the accumulator init.  No MXU, no h -> bf16 cast.
    h = b1_ref[...]                                  # (128, 1), broadcasts up
    for k in range(w1.shape[1]):                     # unrolled, K = 4
        h = h + w1[:, k:k + 1] * x[k:k + 1, :]       # (128, TILE_B)

    # dropout(p=0.6): identity in eval/inference mode.
    # TODO(synk): training-mode dropout (pltpu.prng_random_bits mask + 1/(1-p)
    # scale) intentionally not implemented.

    # relu (VPU, f32).
    h = jnp.maximum(h, 0.0)

    # affine2 folded into a single logit-difference row: d = wd . relu(h) + bd.
    # Hidden axis is on sublanes -> 16 vreg adds + one sublane reduce.
    d = jnp.sum(wd_ref[...] * h, axis=0, keepdims=True) + bd_ref[...]

    # 2-class softmax == sigmoid of the logit difference.  Lane-dense, no
    # cross-lane reductions; exp overflow saturates cleanly to p0 in {0, 1}.
    o_ref[...] = pl.reciprocal(1.0 + jnp.exp(d), approx=True)


def _round_up(n, m):
    return ((n + m - 1) // m) * m


def _choose_tile_b(b_pad, requested, min_tiles=2):
    """Largest multiple of 128 <= requested that divides b_pad, preferring a
    split into >= min_tiles grid steps (so v7x's two TensorCores both work)."""
    n = b_pad // 128
    max_t = max(1, min(requested // 128, n))
    for need in (min_tiles, 1):
        for t in range(max_t, 0, -1):
            if n % t == 0 and n // t >= need:
                return t * 128
    return 128


@functools.partial(jax.jit, static_argnames=("tile_b",))
def policy_forward(x, w1, b1, w2, b2, *, tile_b=8192):
    """Forward pass of Policy.

    x: (B, 4) f32.  Params in PyTorch layout: w1 (128, 4), b1 (128,),
    w2 (2, 128), b2 (2,).  Returns softmax probabilities, shape (B, 2) f32.
    """
    B, F = x.shape
    H = w1.shape[0]          # 128

    B_pad = _round_up(B, 128)
    tile = _choose_tile_b(B_pad, max(128, tile_b))
    grid = (B_pad // tile,)

    # Lane-dense (feature, batch) layout; pure f32, no wrapper dtype plumbing.
    xT = jnp.pad(x.T.astype(jnp.float32), ((0, 0), (0, B_pad - B)))
    b1_c = b1.reshape(H, 1).astype(jnp.float32)
    wd = (w2[1] - w2[0]).reshape(H, 1).astype(jnp.float32)    # logit-diff row
    bd = (b2[1] - b2[0]).reshape(1, 1).astype(jnp.float32)

    cost = pl.CostEstimate(
        flops=int(B_pad) * (2 * H * F + 4 * H),
        transcendentals=2 * int(B_pad),
        bytes_accessed=4 * (F * B_pad + B_pad + H * F + 2 * H + 1),
    )

    p0 = pl.pallas_call(
        policy_kernel,
        out_shape=jax.ShapeDtypeStruct((1, B_pad), jnp.float32),
        grid=grid,
        in_specs=[
            # Streamed batch tile (double-buffered by the pipeline).
            pl.BlockSpec((F, tile), lambda i: (0, i)),
            # Params: same block index every step -> VMEM-resident.
            pl.BlockSpec((H, F), lambda i: (0, 0)),
            pl.BlockSpec((H, 1), lambda i: (0, 0)),
            pl.BlockSpec((H, 1), lambda i: (0, 0)),
            pl.BlockSpec((1, 1), lambda i: (0, 0)),
        ],
        out_specs=pl.BlockSpec((1, tile), lambda i: (0, i)),
        compiler_params=pltpu.CompilerParams(
            dimension_semantics=("parallel",),   # shard batch tiles on v7x
        ),
        cost_estimate=cost,
    )(xT, w1.astype(jnp.float32), b1_c, wd, bd)

    # PyTorch-facing (B, 2): [P(a=0), P(a=1)] with P(a=1) = 1 - P(a=0).
    p0 = p0[0, :B]
    return jnp.stack([p0, 1.0 - p0], axis=1)


def reference_forward(x, w1, b1, w2, b2):
    """Pure-JAX f32 reference (PyTorch eval-mode forward)."""
    h = jnp.maximum(x @ w1.T + b1, 0.0)
    s = h @ w2.T + b2
    return jax.nn.softmax(s, axis=1)


def init_params(key):
    """PyTorch nn.Linear default init U(-1/sqrt(fan_in), +), (out, in) layout."""
    k1, k2, k3, k4 = jax.random.split(key, 4)
    bound1 = 1.0 / jnp.sqrt(4.0)
    bound2 = 1.0 / jnp.sqrt(128.0)
    w1 = jax.random.uniform(k1, (128, 4), jnp.float32, -bound1, bound1)
    b1 = jax.random.uniform(k2, (128,), jnp.float32, -bound1, bound1)
    w2 = jax.random.uniform(k3, (2, 128), jnp.float32, -bound2, bound2)
    b2 = jax.random.uniform(k4, (2,), jnp.float32, -bound2, bound2)
    return w1, b1, w2, b2


if __name__ == "__main__":
    key = jax.random.PRNGKey(0)
    k_params, k_x1, k_x2 = jax.random.split(key, 3)
    w1, b1, w2, b2 = init_params(k_params)

    # Small shape implied by the module: batch of CartPole observations (B, 4).
    x = jax.random.normal(k_x1, (2, 4), jnp.float32)
    out = jax.block_until_ready(policy_forward(x, w1, b1, w2, b2))
    ref = reference_forward(x, w1, b1, w2, b2)
    assert out.shape == (2, 2)
    assert jnp.allclose(out, ref, atol=2e-3), "mismatch vs reference (B=2)"
    assert jnp.allclose(jnp.sum(out, axis=1), 1.0, atol=1e-5)

    # Exercise the multi-tile grid + 128-padding path: B=260 -> 3 grid steps.
    x_big = jax.random.normal(k_x2, (260, 4), jnp.float32)
    out_big = jax.block_until_ready(policy_forward(x_big, w1, b1, w2, b2))
    ref_big = reference_forward(x_big, w1, b1, w2, b2)
    assert out_big.shape == (260, 2)
    assert jnp.allclose(out_big, ref_big, atol=2e-3), "mismatch vs reference (B=260)"
    assert jnp.allclose(jnp.sum(out_big, axis=1), 1.0, atol=1e-5)

    print("KERNEL_OK")
</pallas_src>

<mosaic_0001>
module attributes {stable_mosaic.version = 11 : i64} {
  func.func @policy_kernel(%arg0: i32, %arg1: memref<4x128xf32, #tpu.memory_space<vmem>>, %arg2: memref<128x4xf32, #tpu.memory_space<vmem>>, %arg3: memref<128x1xf32, #tpu.memory_space<vmem>>, %arg4: memref<128x1xf32, #tpu.memory_space<vmem>>, %arg5: memref<1x1xf32, #tpu.memory_space<vmem>>, %arg6: memref<1x128xf32, #tpu.memory_space<vmem>>) attributes {dimension_semantics = [#tpu.dimension_semantics<parallel>], iteration_bounds = array<i64: 1>, scalar_prefetch = 0 : i64, scratch_operands = 0 : i64, tpu.core_type = #tpu.core_type<tc>, window_params = [{transform_indices = @transform_0, window_bounds = array<i64: 4, 128>}, {pipeline_mode = #tpu.pipeline_mode<synchronous>, transform_indices = @transform_1, window_bounds = array<i64: 128, 4>}, {pipeline_mode = #tpu.pipeline_mode<synchronous>, transform_indices = @transform_2, window_bounds = array<i64: 128, 1>}, {pipeline_mode = #tpu.pipeline_mode<synchronous>, transform_indices = @transform_3, window_bounds = array<i64: 128, 1>}, {pipeline_mode = #tpu.pipeline_mode<synchronous>, transform_indices = @transform_4, window_bounds = array<i64: 1, 1>}, {transform_indices = @transform_5, window_bounds = array<i64: 1, 128>}]} {
    %c0 = arith.constant 0 : index
    %c0_0 = arith.constant 0 : index
    %0 = vector.load %arg1[%c0, %c0_0] : memref<4x128xf32, #tpu.memory_space<vmem>>, vector<4x128xf32>
    %c0_1 = arith.constant 0 : index
    %c0_2 = arith.constant 0 : index
    %1 = vector.load %arg2[%c0_1, %c0_2] : memref<128x4xf32, #tpu.memory_space<vmem>>, vector<128x4xf32>
    %c0_3 = arith.constant 0 : index
    %c0_4 = arith.constant 0 : index
    %2 = vector.load %arg3[%c0_3, %c0_4] : memref<128x1xf32, #tpu.memory_space<vmem>>, vector<128x1xf32>
    %3 = vector.extract_strided_slice %1 {offsets = [0, 0], sizes = [128, 1], strides = [1, 1]} : vector<128x4xf32> to vector<128x1xf32>
    %4 = vector.extract_strided_slice %0 {offsets = [0, 0], sizes = [1, 128], strides = [1, 1]} : vector<4x128xf32> to vector<1x128xf32>
    %5 = vector.broadcast %3 : vector<128x1xf32> to vector<128x128xf32>
    %6 = vector.broadcast %4 : vector<1x128xf32> to vector<128x128xf32>
    %7 = arith.mulf %5, %6 : vector<128x128xf32>
    %8 = vector.broadcast %2 : vector<128x1xf32> to vector<128x128xf32>
    %9 = arith.addf %8, %7 : vector<128x128xf32>
    %10 = vector.extract_strided_slice %1 {offsets = [0, 1], sizes = [128, 1], strides = [1, 1]} : vector<128x4xf32> to vector<128x1xf32>
    %11 = vector.extract_strided_slice %0 {offsets = [1, 0], sizes = [1, 128], strides = [1, 1]} : vector<4x128xf32> to vector<1x128xf32>
    %12 = vector.broadcast %10 : vector<128x1xf32> to vector<128x128xf32>
    %13 = vector.broadcast %11 : vector<1x128xf32> to vector<128x128xf32>
    %14 = arith.mulf %12, %13 : vector<128x128xf32>
    %15 = arith.addf %9, %14 : vector<128x128xf32>
    %16 = vector.extract_strided_slice %1 {offsets = [0, 2], sizes = [128, 1], strides = [1, 1]} : vector<128x4xf32> to vector<128x1xf32>
    %17 = vector.extract_strided_slice %0 {offsets = [2, 0], sizes = [1, 128], strides = [1, 1]} : vector<4x128xf32> to vector<1x128xf32>
    %18 = vector.broadcast %16 : vector<128x1xf32> to vector<128x128xf32>
    %19 = vector.broadcast %17 : vector<1x128xf32> to vector<128x128xf32>
    %20 = arith.mulf %18, %19 : vector<128x128xf32>
    %21 = arith.addf %15, %20 : vector<128x128xf32>
    %22 = vector.extract_strided_slice %1 {offsets = [0, 3], sizes = [128, 1], strides = [1, 1]} : vector<128x4xf32> to vector<128x1xf32>
    %23 = vector.extract_strided_slice %0 {offsets = [3, 0], sizes = [1, 128], strides = [1, 1]} : vector<4x128xf32> to vector<1x128xf32>
    %24 = vector.broadcast %22 : vector<128x1xf32> to vector<128x128xf32>
    %25 = vector.broadcast %23 : vector<1x128xf32> to vector<128x128xf32>
    %26 = arith.mulf %24, %25 : vector<128x128xf32>
    %27 = arith.addf %21, %26 : vector<128x128xf32>
    %cst = arith.constant 0.000000e+00 : f32
    %28 = vector.broadcast %cst : f32 to vector<128x128xf32>
    %29 = arith.maximumf %27, %28 : vector<128x128xf32>
    %c0_5 = arith.constant 0 : index
    %c0_6 = arith.constant 0 : index
    %30 = vector.load %arg4[%c0_5, %c0_6] : memref<128x1xf32, #tpu.memory_space<vmem>>, vector<128x1xf32>
    %31 = vector.broadcast %30 : vector<128x1xf32> to vector<128x128xf32>
    %32 = arith.mulf %31, %29 : vector<128x128xf32>
    %cst_7 = arith.constant dense<0.000000e+00> : vector<128xf32>
    %33 = vector.multi_reduction <add>, %32, %cst_7 [0] : vector<128x128xf32> to vector<128xf32>
    %34 = vector.shape_cast %33 : vector<128xf32> to vector<1x128xf32>
    %c0_8 = arith.constant 0 : index
    %c0_9 = arith.constant 0 : index
    %35 = vector.load %arg5[%c0_8, %c0_9] : memref<1x1xf32, #tpu.memory_space<vmem>>, vector<1x1xf32>
    %36 = vector.broadcast %35 : vector<1x1xf32> to vector<1x128xf32>
    %37 = arith.addf %34, %36 : vector<1x128xf32>
    %38 = math.exp %37 : vector<1x128xf32>
    %cst_10 = arith.constant 1.000000e+00 : f32
    %39 = vector.broadcast %cst_10 : f32 to vector<1x128xf32>
    %40 = arith.addf %39, %38 : vector<1x128xf32>
    %41 = tpu.reciprocal %40 {approx = true} : vector<1x128xf32> -> vector<1x128xf32>
    %c0_11 = arith.constant 0 : index
    %c0_12 = arith.constant 0 : index
    %42 = vector.load %arg6[%c0_11, %c0_12] : memref<1x128xf32, #tpu.memory_space<vmem>>, vector<1x128xf32>
    tpu.vector_store %arg6[%c0_11, %c0_12], %41 {strides = array<i32>} : memref<1x128xf32, #tpu.memory_space<vmem>>, vector<1x128xf32>,
    return
  }
  func.func @transform_0(%arg0: i32) -> (i32, i32) {
    %c0_i32 = arith.constant 0 : i32
    %c0_i32_0 = arith.constant 0 : i32
    return %c0_i32, %arg0 : i32, i32
  }
  func.func @transform_1(%arg0: i32) -> (i32, i32) {
    %c0_i32 = arith.constant 0 : i32
    %c0_i32_0 = arith.constant 0 : i32
    %c0_i32_1 = arith.constant 0 : i32
    return %c0_i32, %c0_i32_0 : i32, i32
  }
  func.func @transform_2(%arg0: i32) -> (i32, i32) {
    %c0_i32 = arith.constant 0 : i32
    %c0_i32_0 = arith.constant 0 : i32
    %c0_i32_1 = arith.constant 0 : i32
    return %c0_i32, %c0_i32_0 : i32, i32
  }
  func.func @transform_3(%arg0: i32) -> (i32, i32) {
    %c0_i32 = arith.constant 0 : i32
    %c0_i32_0 = arith.constant 0 : i32
    %c0_i32_1 = arith.constant 0 : i32
    return %c0_i32, %c0_i32_0 : i32, i32
  }
  func.func @transform_4(%arg0: i32) -> (i32, i32) {
    %c0_i32 = arith.constant 0 : i32
    %c0_i32_0 = arith.constant 0 : i32
    %c0_i32_1 = arith.constant 0 : i32
    return %c0_i32, %c0_i32_0 : i32, i32
  }
  func.func @transform_5(%arg0: i32) -> (i32, i32) {
    %c0_i32 = arith.constant 0 : i32
    %c0_i32_0 = arith.constant 0 : i32
    return %c0_i32, %arg0 : i32, i32
  }
}

</mosaic_0001>

<bundles_post_ra>
// kernel: policy_forward.1
= control target key start
LH: loop header
LB: loop body
LE: loop exit
PB: predicated region body
PF: predicated region fallthrough
CT: control target
= control target key end

     0   :  { %v744_v0 = vmov 1   ;;  %v745_v1 = vmov 0   ;;  %v746_v13 = vmov 2   ;;  %v747_v25 = vmov 3   ;;  %s1248_s1 = inlined_call_operand.vmem [shape: f32[128,4], index: 1, kind: input, shape index: {}]   ;;  %s1249_s2 = inlined_call_operand.vmem [shape: f32[128,1], index: 2, kind: input, shape index: {}]   ;;  %s1250_s4 = inlined_call_operand.<no memory space> [shape: f32[1,1], index: 4, kind: input, shape index: {}]   ;;  %s1251_s3 = inlined_call_operand.vmem [shape: f32[128,1], index: 3, kind: input, shape index: {}]   ;;  %s1252_s0 = inlined_call_operand.vmem [shape: f32[4,128], index: 0, kind: input, shape index: {}]   ;;  %s1253_s5 = inlined_call_operand.vmem [shape: f32[1,128], index: 5, kind: output, shape index: {}]  }
   0x1   :  { %725 = vset.pattern.permute.xlu0 %v744_v0  ;;  %724 = vset.pattern.permute.xlu1 %v745_v1  ;;  %v783_v2 = vld [vmem:[%s1248_s1 + $0x10] sm:$0xff]  ;;  %v788_v3 = vld [vmem:[%s1248_s1] sm:$0xff]  ;;  %v795_v4 = vld [vmem:[%s1248_s1 + $0x18] sm:$0xff]  ;;  %v10_v27 = vstv %s1250_s4  ;;  %v135_v55 = vlaneseq }
   0x2   :  { %67 = vperm.xlu1 %724, %v783_v2   ;;  %252 = vperm.xlu0 %725, %v788_v3   ;;  %v802_v5 = vld [vmem:[%s1248_s1 + $0x28] sm:$0xff]  ;;  %v809_v6 = vld [vmem:[%s1248_s1 + $0x38] sm:$0xff]  ;;  %v857_v15 = vld [vmem:[%s1248_s1 + $0x20] sm:$0xff]  ;;  %11 = vst [vmem:[#allocation2] sm:$0x1] %v10_v27 }
   0x3   :  { %v816_v7 = vld [vmem:[%s1248_s1 + $0x48] sm:$0xff]  ;;  %v823_v8 = vld [vmem:[%s1248_s1 + $0x58] sm:$0xff]  ;;  %v866_v17 = vld [vmem:[%s1248_s1 + $0x30] sm:$0xff]  ;;  %v1002_v59 = vshrl.u32 %v135_v55, 7 }
   0x4   :  { %v830_v9 = vld [vmem:[%s1248_s1 + $0x68] sm:$0xff]  ;;  %v837_v10 = vld [vmem:[%s1248_s1 + $0x78] sm:$0xff]  ;;  %v875_v19 = vld [vmem:[%s1248_s1 + $0x40] sm:$0xff] }
   0x5   :  { %v40_v11 = vld [vmem:[%s1249_s2 + $0x8] sm:$0xff]  ;;  %v42_v14 = vld [vmem:[%s1249_s2 + $0x18] sm:$0xff]  ;;  %v884_v21 = vld [vmem:[%s1248_s1 + $0x50] sm:$0xff]  ;;  %v137_v62 = vsub.s32 0, %v1002_v59  ;;  %v317_v63 = vsub.s32 1, %v1002_v59 }
   0x6   :  { %72 = vperm.xlu1 %724, %v795_v4   ;;  %264 = vperm.xlu0 %725, %v795_v4   ;;  %v847_v12 = vld [vmem:[%s1248_s1 + $0x8] sm:$0xff]  ;;  %v46_v18 = vld [vmem:[%s1249_s2 + $0x38] sm:$0xff]  ;;  %v893_v23 = vld [vmem:[%s1248_s1 + $0x60] sm:$0xff] }
   0x7   :  { %v44_v16 = vld [vmem:[%s1249_s2 + $0x28] sm:$0xff]  ;;  %v50_v22 = vld [vmem:[%s1249_s2 + $0x58] sm:$0xff]  ;;  %v926_v28 = vld [vmem:[%s1248_s1 + $0x70] sm:$0xff] }
   0x8   :  { %v48_v20 = vld [vmem:[%s1249_s2 + $0x48] sm:$0xff]  ;;  %v54_v26 = vld [vmem:[%s1249_s2 + $0x78] sm:$0xff]  ;;  %v39_v29 = vld [vmem:[%s1249_s2] sm:$0xff] }
   0x9   :  { %v52_v24 = vld [vmem:[%s1249_s2 + $0x68] sm:$0xff]  ;;  %v41_v30 = vld [vmem:[%s1249_s2 + $0x10] sm:$0xff]  ;;  %v43_v31 = vld [vmem:[%s1249_s2 + $0x20] sm:$0xff] }
   0xa   :  { %82 = vperm.xlu1 %724, %v802_v5   ;;  %272 = vperm.xlu0 %725, %v802_v5   ;;  %v45_v32 = vld [vmem:[%s1249_s2 + $0x30] sm:$0xff]  ;;  %v47_v33 = vld [vmem:[%s1249_s2 + $0x40] sm:$0xff]  ;;  %v570_v45 = vld [vmem:[%s1251_s3 + $0x18] sm:$0xff] }
   0xb   :  { %v49_v34 = vld [vmem:[%s1249_s2 + $0x50] sm:$0xff]  ;;  %v51_v35 = vld [vmem:[%s1249_s2 + $0x60] sm:$0xff]  ;;  %v568_v49 = vld [vmem:[%s1251_s3 + $0x8] sm:$0xff] }
   0xc   :  { %v53_v36 = vld [vmem:[%s1249_s2 + $0x70] sm:$0xff]  ;;  %v567_v39 = vld [vmem:[%s1251_s3] sm:$0xff]  ;;  %v572_v52 = vld [vmem:[%s1251_s3 + $0x28] sm:$0xff] }
   0xd   :  { %v569_v42 = vld [vmem:[%s1251_s3 + $0x10] sm:$0xff]  ;;  %v571_v48 = vld [vmem:[%s1251_s3 + $0x20] sm:$0xff]  ;;  %v574_v60 = vld [vmem:[%s1251_s3 + $0x38] sm:$0xff] }
   0xe   :  { %92 = vperm.xlu1 %724, %v809_v6   ;;  %280 = vperm.xlu0 %725, %v809_v6   ;;  %v573_v56 = vld [vmem:[%s1251_s3 + $0x30] sm:$0xff] }
  0x12   :  { %102 = vperm.xlu1 %724, %v816_v7   ;;  %288 = vperm.xlu0 %725, %v816_v7  }
  0x16   :  { %112 = vperm.xlu1 %724, %v823_v8   ;;  %296 = vperm.xlu0 %725, %v823_v8  }
  0x1a   :  { %122 = vperm.xlu1 %724, %v830_v9   ;;  %304 = vperm.xlu0 %725, %v830_v9  }
  0x1e   :  { %132 = vperm.xlu1 %724, %v837_v10   ;;  %312 = vperm.xlu0 %725, %v837_v10  }
  0x22   :  { %162 = vperm.xlu1 %724, %v40_v11   ;;  %728 = vset.pattern.permute.xlu0 %v746_v13 }
  0x23   :  { %356 = vperm.xlu0 %728, %v847_v12  }
  0x26   :  { %172 = vperm.xlu1 %724, %v42_v14   ;;  %v576_v14 = vld [vmem:[%s1251_s3 + $0x48] sm:$0xff] }
  0x27   :  { %368 = vperm.xlu0 %728, %v857_v15  }
  0x2a   :  { %182 = vperm.xlu1 %724, %v44_v16  }
  0x2b   :  { %376 = vperm.xlu0 %728, %v866_v17  }
  0x2e   :  { %192 = vperm.xlu1 %724, %v46_v18  }
  0x2f   :  { %384 = vperm.xlu0 %728, %v875_v19  }
  0x32   :  { %202 = vperm.xlu1 %724, %v48_v20  }
  0x33   :  { %392 = vperm.xlu0 %728, %v884_v21  }
  0x36   :  { %212 = vperm.xlu1 %724, %v50_v22  }
  0x37   :  { %400 = vperm.xlu0 %728, %v893_v23  }
  0x3a   :  { %222 = vperm.xlu1 %724, %v52_v24  }
  0x3b   :  { %729 = vset.pattern.permute.xlu0 %v747_v25 }
  0x3c   :  { %452 = vperm.xlu0 %729, %v788_v3  }
  0x3e   :  { %232 = vperm.xlu1 %724, %v54_v26  }
  0x40   :  { %464 = vperm.xlu0 %729, %v795_v4  }
  0x42   :  { %726 = vset.pattern.permute.xlu1 %v744_v0 }
  0x43   :  { %256 = vperm.xlu1 %726, %v847_v12  }
  0x44   :  { %731 = vset.pattern.permute.xlu0 %v745_v1 }
  0x45   :  { %57 = vperm.xlu0 %731, %v788_v3  }
  0x47   :  { %260 = vperm.xlu1 %726, %v783_v2  }
  0x49   :  { %62 = vperm.xlu0 %731, %v847_v12  }
  0x4b   :  { %268 = vperm.xlu1 %726, %v857_v15  }
  0x4d   :  { %77 = vperm.xlu0 %731, %v857_v15  }
  0x4f   :  { %276 = vperm.xlu1 %726, %v866_v17  }
  0x51   :  { %87 = vperm.xlu0 %731, %v866_v17  }
  0x53   :  { %284 = vperm.xlu1 %726, %v875_v19  }
  0x55   :  { %97 = vperm.xlu0 %731, %v875_v19  }
  0x57   :  { %292 = vperm.xlu1 %726, %v884_v21  }
  0x59   :  { %107 = vperm.xlu0 %731, %v884_v21  }
  0x5b   :  { %300 = vperm.xlu1 %726, %v893_v23  }
  0x5d   :  { %117 = vperm.xlu0 %731, %v893_v23  }
  0x5f   :  { %308 = vperm.xlu1 %726, %v926_v28  }
  0x61   :  { %127 = vperm.xlu0 %731, %v926_v28  }
  0x63   :  { %727 = vset.pattern.permute.xlu1 %v746_v13 }
  0x64   :  { %352 = vperm.xlu1 %727, %v788_v3   ;;  %v1020_v3 = vld [vmem:[%s1252_s0] sm:$0xf] }
  0x65   :  { %157 = vperm.xlu0 %731, %v39_v29   ;;  %v1031_v11 = vrot.slane %v1020_v3, %v317_v63  ;;  %v417_v63 = vsub.s32 2, %v1002_v59 }
  0x68   :  { %360 = vperm.xlu1 %727, %v783_v2  }
  0x69   :  { %167 = vperm.xlu0 %731, %v41_v30  }
  0x6c   :  { %364 = vperm.xlu1 %727, %v795_v4  }
  0x6d   :  { %177 = vperm.xlu0 %731, %v43_v31  }
  0x70   :  { %372 = vperm.xlu1 %727, %v802_v5  }
  0x71   :  { %187 = vperm.xlu0 %731, %v45_v32  }
  0x74   :  { %380 = vperm.xlu1 %727, %v809_v6  }
  0x75   :  { %197 = vperm.xlu0 %731, %v47_v33  }
  0x78   :  { %388 = vperm.xlu1 %727, %v816_v7  }
  0x79   :  { %207 = vperm.xlu0 %731, %v49_v34  }
  0x7c   :  { %396 = vperm.xlu1 %727, %v823_v8  }
  0x7d   :  { %217 = vperm.xlu0 %731, %v51_v35  }
  0x80   :  { %404 = vperm.xlu1 %727, %v830_v9  }
  0x81   :  { %v964_v37 = vpop.permute.xlu1 %67  ;;  %227 = vperm.xlu0 %731, %v53_v36   ;;  %v966_v38 = vpop.permute.xlu0 %252 }
  0x84   :  { %730 = vset.pattern.permute.xlu1 %v747_v25 }
  0x85   :  { %v73_v40 = vpop.permute.xlu1 %72  ;;  %456 = vperm.xlu1 %730, %v847_v12   ;;  %585 = vperm.xlu0 %731, %v567_v39   ;;  %v265_v41 = vpop.permute.xlu0 %264 }
  0x86   :  { %v322_v16 = vmul.f32 %v1031_v11, %v265_v41 }
  0x89   :  { %v83_v43 = vpop.permute.xlu1 %82  ;;  %460 = vperm.xlu1 %730, %v783_v2   ;;  %595 = vperm.xlu0 %731, %v569_v42   ;;  %v273_v44 = vpop.permute.xlu0 %272  ;;  %v575_v2 = vld [vmem:[%s1251_s3 + $0x40] sm:$0xff] }
  0x8d   :  { %v93_v46 = vpop.permute.xlu1 %92  ;;  %468 = vperm.xlu1 %730, %v857_v15   ;;  %600 = vperm.xlu0 %731, %v570_v45   ;;  %v281_v47 = vpop.permute.xlu0 %280 }
  0x8e   :  { %v326_v31 = vmul.f32 %v1031_v11, %v281_v47 }
  0x91   :  { %v103_v50 = vpop.permute.xlu1 %102  ;;  %732 = vset.pattern.permute.xlu1 %v745_v1  ;;  %605 = vperm.xlu0 %731, %v571_v48   ;;  %v289_v51 = vpop.permute.xlu0 %288 }
  0x92   :  { %590 = vperm.xlu1 %732, %v568_v49  }
  0x95   :  { %v113_v53 = vpop.permute.xlu1 %112  ;;  %610 = vperm.xlu0 %731, %v572_v52   ;;  %v991_v54 = vpop.permute.xlu0 %296 }
  0x96   :  { %733 = vset.pattern.permute.xlu1 %v747_v25  ;;  %v330_v42 = vmul.f32 %v1031_v11, %v991_v54 }
  0x97   :  { %472 = vperm.xlu1 %733, %v802_v5   ;;  %v1028_v5 = vrot.slane %v1020_v3, %v137_v62 }
  0x99   :  { %v998_v57 = vpop.permute.xlu1 %122  ;;  %615 = vperm.xlu0 %731, %v573_v56   ;;  %v1000_v58 = vpop.permute.xlu0 %304  ;;  %v144_v20 = vmul.f32 %v1028_v5, %v83_v43  ;;  %v146_v29 = vmul.f32 %v1028_v5, %v93_v46  ;;  %v150_v39 = vmul.f32 %v1028_v5, %v113_v53  ;;  %v700_v46 = vld [vmem:[#allocation2] sm:$0x1] }
  0x9a   :  { %v332_v48 = vmul.f32 %v1031_v11, %v1000_v58 }
  0x9b   :  { %476 = vperm.xlu1 %733, %v866_v17  }
  0x9d   :  { %v1008_v61 = vpop.permute.xlu1 %132  ;;  %620 = vperm.xlu0 %731, %v574_v60   ;;  %v1012_v0 = vpop.permute.xlu0 %312 }
  0x9e   :  { %v154_v52 = vmul.f32 %v1028_v5, %v1008_v61  ;;  %v334_v54 = vmul.f32 %v1031_v11, %v1012_v0  ;;  %v578_v61 = vld [vmem:[%s1251_s3 + $0x58] sm:$0xff] }
  0x9f   :  { %480 = vperm.xlu1 %733, %v809_v6   ;;  %v142_v6 = vmul.f32 %v1028_v5, %v73_v40 }
  0xa1   :  { %v1023_v4 = vpop.permute.xlu1 %162  ;;  %625 = vperm.xlu0 %731, %v575_v2  }
  0xa2   :  { %v1033_v12 = vpop.permute.xlu0 %356 }
  0xa3   :  { %484 = vperm.xlu1 %733, %v875_v19   ;;  %v324_v19 = vmul.f32 %v1031_v11, %v273_v44 }
  0xa5   :  { %v173_v15 = vpop.permute.xlu1 %172  ;;  %630 = vperm.xlu0 %731, %v576_v14   ;;  %v579_v14 = vld [vmem:[%s1251_s3 + $0x60] sm:$0xff] }
  0xa6   :  { %v238_v17 = vadd.f32 %v173_v15, %v142_v6  ;;  %v1041_v18 = vpop.permute.xlu0 %368 }
  0xa7   :  { %488 = vperm.xlu1 %733, %v816_v7  }
  0xa8   :  { %v1045_v22 = vadd.f32 %v322_v16, %v238_v17 }
  0xa9   :  { %v183_v24 = vpop.permute.xlu1 %182  ;;  %735 = vset.pattern.permute.xlu0 %v747_v25 }
  0xaa   :  { %v240_v26 = vadd.f32 %v183_v24, %v144_v20  ;;  %504 = vperm.xlu0 %735, %v830_v9   ;;  %v1050_v27 = vpop.permute.xlu0 %376  ;;  %v148_v9 = vmul.f32 %v1028_v5, %v103_v50  ;;  %v577_v50 = vld [vmem:[%s1251_s3 + $0x50] sm:$0xff] }
  0xab   :  { %492 = vperm.xlu1 %733, %v884_v21   ;;  %v328_v21 = vmul.f32 %v1031_v11, %v289_v51 }
  0xac   :  { %v1054_v30 = vadd.f32 %v324_v19, %v240_v26 }
  0xad   :  { %v193_v7 = vpop.permute.xlu1 %192 }
  0xae   :  { %v242_v32 = vadd.f32 %v193_v7, %v146_v29  ;;  %508 = vperm.xlu0 %735, %v926_v28   ;;  %v1058_v25 = vpop.permute.xlu0 %384  ;;  %v582_v7 = vld [vmem:[%s1251_s3 + $0x78] sm:$0xff] }
  0xaf   :  { %496 = vperm.xlu1 %733, %v823_v8   ;;  %v580_v8 = vld [vmem:[%s1251_s3 + $0x68] sm:$0xff] }
  0xb0   :  { %v1062_v33 = vadd.f32 %v326_v31, %v242_v32 }
  0xb1   :  { %v203_v34 = vpop.permute.xlu1 %202 }
  0xb2   :  { %v244_v35 = vadd.f32 %v203_v34, %v148_v9  ;;  %512 = vperm.xlu0 %735, %v837_v10   ;;  %v1066_v36 = vpop.permute.xlu0 %392 }
  0xb3   :  { %500 = vperm.xlu1 %733, %v893_v23   ;;  %v152_v23 = vmul.f32 %v1028_v5, %v998_v57 }
  0xb4   :  { %v1070_v40 = vadd.f32 %v328_v21, %v244_v35 }
  0xb5   :  { %v213_v41 = vpop.permute.xlu1 %212 }
  0xb6   :  { %v246_v43 = vadd.f32 %v213_v41, %v150_v39  ;;  %739 = vset.pattern.permute.xlu0 %v745_v1  ;;  %v1078_v44 = vpop.permute.xlu0 %400  ;;  %v517_v39 = vsub.s32 3, %v1002_v59 }
  0xb7   :  { %734 = vset.pattern.permute.xlu1 %v746_v13  ;;  %650 = vperm.xlu0 %739, %v580_v8  }
  0xb8   :  { %v1083_v45 = vadd.f32 %v330_v42, %v246_v43  ;;  %408 = vperm.xlu1 %734, %v926_v28   ;;  %v319_v43 = vmul.f32 %v1031_v11, %v966_v38 }
  0xb9   :  { %v223_v47 = vpop.permute.xlu1 %222 }
  0xba   :  { %v248_v49 = vadd.f32 %v223_v47, %v152_v23  ;;  %v1141_v23 = vrot.slane %v1020_v3, %v517_v39  ;;  %v141_v47 = vmul.f32 %v1028_v5, %v964_v37 }
  0xbb   :  { %v453_v51 = vpop.permute.xlu0 %452  ;;  %703 = vperm.xlu0 %739, %v700_v46  }
  0xbc   :  { %v1093_v53 = vadd.f32 %v332_v48, %v248_v49  ;;  %736 = vset.pattern.permute.xlu1 %v745_v1 }
  0xbd   :  { %v233_v28 = vpop.permute.xlu1 %232  ;;  %635 = vperm.xlu1 %736, %v577_v50  }
  0xbe   :  { %v250_v55 = vadd.f32 %v233_v28, %v154_v52  ;;  %v519_v28 = vmul.f32 %v1141_v23, %v453_v51 }
  0xbf   :  { %v1098_v56 = vpop.permute.xlu0 %464 }
  0xc0   :  { %v1100_v57 = vadd.f32 %v334_v54, %v250_v55  ;;  %v522_v51 = vmul.f32 %v1141_v23, %v1098_v56 }
  0xc1   :  { %737 = vset.pattern.permute.xlu1 %v746_v13  ;;  %v1113_v13 = vrot.slane %v1020_v3, %v417_v63 }
  0xc2   :  { %v257_v58 = vpop.permute.xlu1 %256  ;;  %412 = vperm.xlu1 %737, %v837_v10  }
  0xc3   :  { %v320_v15 = vmul.f32 %v1031_v11, %v257_v58  ;;  %v420_v20 = vmul.f32 %v1113_v13, %v1033_v12 }
  0xc4   :  { %v58_v60 = vpop.permute.xlu0 %57 }
  0xc5   :  { %v139_v8 = vmul.f32 %v1028_v5, %v58_v60 }
  0xc6   :  { %v261_v2 = vpop.permute.xlu1 %260  ;;  %738 = vset.pattern.permute.xlu1 %v745_v1  ;;  %v581_v1 = vld [vmem:[%s1251_s3 + $0x70] sm:$0xff] }
  0xc7   :  { %640 = vperm.xlu1 %738, %v578_v61   ;;  %v321_v54 = vmul.f32 %v1031_v11, %v261_v2 }
  0xc8   :  { %v63_v0 = vpop.permute.xlu0 %62 }
  0xc9   :  { %v140_v10 = vmul.f32 %v1028_v5, %v63_v0 }
  0xca   :  { %v269_v6 = vpop.permute.xlu1 %268 }
  0xcb   :  { %v236_v16 = vadd.f32 %v1023_v4, %v140_v10  ;;  %645 = vperm.xlu1 %738, %v579_v14   ;;  %v323_v14 = vmul.f32 %v1031_v11, %v269_v6 }
  0xcc   :  { %v78_v17 = vpop.permute.xlu0 %77 }
  0xcd   :  { %v336_v24 = vadd.f32 %v320_v15, %v236_v16  ;;  %v143_v38 = vmul.f32 %v1028_v5, %v78_v17  ;;  %v423_v16 = vmul.f32 %v1113_v13, %v1041_v18 }
  0xce   :  { %v277_v19 = vpop.permute.xlu1 %276 }
  0xcf   :  { %655 = vperm.xlu1 %738, %v581_v1   ;;  %v1123_v26 = vadd.f32 %v420_v20, %v336_v24  ;;  %v325_v6 = vmul.f32 %v1031_v11, %v277_v19 }
  0xd0   :  { %v88_v29 = vpop.permute.xlu0 %87 }
  0xd1   :  { %v145_v17 = vmul.f32 %v1028_v5, %v88_v29 }
  0xd2   :  { %v285_v4 = vpop.permute.xlu1 %284 }
  0xd3   :  { %660 = vperm.xlu1 %738, %v582_v7  }
  0xd4   :  { %v98_v31 = vpop.permute.xlu0 %97 }
  0xd5   :  { %v147_v18 = vmul.f32 %v1028_v5, %v98_v31 }
  0xd6   :  { %v293_v32 = vpop.permute.xlu1 %292 }
  0xd8   :  { %v108_v9 = vpop.permute.xlu0 %107 }
  0xda   :  { %v1128_v34 = vpop.permute.xlu1 %300 }
  0xdc   :  { %v1130_v21 = vpop.permute.xlu0 %117 }
  0xde   :  { %v1132_v12 = vpop.permute.xlu1 %308 }
  0xe0   :  { %v1134_v35 = vpop.permute.xlu0 %127 }
  0xe3   :  { %v353_v41 = vpop.permute.xlu1 %352 }
  0xe4   :  { %v158_v42 = vpop.permute.xlu0 %157  ;;  %v419_v48 = vmul.f32 %v1113_v13, %v353_v41 }
  0xe5   :  { %v235_v46 = vadd.f32 %v158_v42, %v139_v8 }
  0xe7   :  { %v335_v49 = vadd.f32 %v319_v43, %v235_v46  ;;  %v361_v50 = vpop.permute.xlu1 %360 }
  0xe8   :  { %v168_v52 = vpop.permute.xlu0 %167  ;;  %v421_v3 = vmul.f32 %v1113_v13, %v361_v50 }
  0xe9   :  { %v435_v55 = vadd.f32 %v419_v48, %v335_v49  ;;  %v237_v58 = vadd.f32 %v168_v52, %v141_v47  ;;  %v327_v47 = vmul.f32 %v1031_v11, %v285_v4 }
  0xeb   :  { %v337_v60 = vadd.f32 %v321_v54, %v237_v58  ;;  %v365_v61 = vpop.permute.xlu1 %364  ;;  %v1150_v63 = vadd.f32 %v519_v28, %v435_v55  ;;  %v329_v54 = vmul.f32 %v1031_v11, %v293_v32  ;;  %v331_v32 = vmul.f32 %v1031_v11, %v1128_v34 }
  0xec   :  { %v422_v37 = vmul.f32 %v1113_v13, %v365_v61  ;;  %v178_v0 = vpop.permute.xlu0 %177  ;;  %v333_v34 = vmul.f32 %v1031_v11, %v1132_v12 }
  0xed   :  { %v239_v10 = vadd.f32 %v178_v0, %v143_v38  ;;  %v437_v15 = vadd.f32 %v421_v3, %v337_v60 }
  0xee   :  { %v438_v2 = vadd.f32 %v422_v37, %v1045_v22  ;;  %v425_v22 = vmul.f32 %v1113_v13, %v1050_v27  ;;  %v149_v27 = vmul.f32 %v1028_v5, %v108_v9 }
  0xef   :  { %v339_v1 = vadd.f32 %v323_v14, %v239_v10  ;;  %v373_v20 = vpop.permute.xlu1 %372 }
  0xf0   :  { %v424_v24 = vmul.f32 %v1113_v13, %v373_v20  ;;  %v188_v7 = vpop.permute.xlu0 %187  ;;  %v1161_v39 = vadd.f32 %v522_v51, %v438_v2 }
  0xf1   :  { %v241_v8 = vadd.f32 %v188_v7, %v145_v17  ;;  %v439_v41 = vadd.f32 %v423_v16, %v339_v1 }
  0xf2   :  { %v1165_v56 = vadd.f32 %v424_v24, %v1054_v30  ;;  %v427_v30 = vmul.f32 %v1113_v13, %v1058_v25  ;;  %v151_v25 = vmul.f32 %v1028_v5, %v1130_v21  ;;  %v153_v21 = vmul.f32 %v1028_v5, %v1134_v35 }
  0xf3   :  { %v341_v29 = vadd.f32 %v325_v6, %v241_v8  ;;  %v381_v42 = vpop.permute.xlu1 %380 }
  0xf4   :  { %v426_v43 = vmul.f32 %v1113_v13, %v381_v42  ;;  %v198_v46 = vpop.permute.xlu0 %197 }
  0xf5   :  { %v243_v48 = vadd.f32 %v198_v46, %v147_v18  ;;  %v1172_v49 = vadd.f32 %v425_v22, %v341_v29 }
  0xf6   :  { %v1175_v19 = vadd.f32 %v426_v43, %v1062_v33  ;;  %v429_v33 = vmul.f32 %v1113_v13, %v1066_v36  ;;  %v431_v36 = vmul.f32 %v1113_v13, %v1078_v44 }
  0xf7   :  { %v343_v50 = vadd.f32 %v327_v47, %v243_v48  ;;  %v389_v31 = vpop.permute.xlu1 %388 }
  0xf8   :  { %v428_v52 = vmul.f32 %v1113_v13, %v389_v31  ;;  %v208_v28 = vpop.permute.xlu0 %207 }
  0xf9   :  { %v245_v55 = vadd.f32 %v208_v28, %v149_v27  ;;  %v1182_v4 = vadd.f32 %v427_v30, %v343_v50  ;;  %v554_v30 = vmax.f32 %v1161_v39, 0.0 }
  0xfa   :  { %v1185_v58 = vadd.f32 %v428_v52, %v1070_v40 }
  0xfb   :  { %v345_v9 = vadd.f32 %v329_v54, %v245_v55  ;;  %v397_v38 = vpop.permute.xlu1 %396 }
  0xfc   :  { %v430_v3 = vmul.f32 %v1113_v13, %v397_v38  ;;  %v218_v60 = vpop.permute.xlu0 %217 }
  0xfd   :  { %v247_v61 = vadd.f32 %v218_v60, %v151_v25  ;;  %v1194_v37 = vadd.f32 %v429_v33, %v345_v9 }
  0xfe   :  { %v1197_v40 = vadd.f32 %v430_v3, %v1083_v45 }
  0xff   :  { %v347_v0 = vadd.f32 %v331_v32, %v247_v61  ;;  %v405_v14 = vpop.permute.xlu1 %404 }
 0x100   :  { %v432_v10 = vmul.f32 %v1113_v13, %v405_v14  ;;  %v228_v51 = vpop.permute.xlu0 %227 }
 0x101   :  { %v249_v2 = vadd.f32 %v228_v51, %v153_v21  ;;  %v1206_v16 = vadd.f32 %v431_v36, %v347_v0 }
 0x102   :  { %v1209_v45 = vadd.f32 %v432_v10, %v1093_v53  ;;  %v551_v53 = vmax.f32 %v1150_v63, 0.0 }
 0x103   :  { %v1211_v17 = vadd.f32 %v333_v34, %v249_v2 }
 0x104   :  { %v457_v44 = vpop.permute.xlu1 %456  ;;  %v586_v1 = vpop.permute.xlu0 %585 }
 0x105   :  { %v520_v5 = vmul.f32 %v1141_v23, %v457_v44  ;;  %v663_v46 = vmul.f32 %v586_v1, %v551_v53 }
 0x107   :  { %v536_v7 = vadd.f32 %v520_v5, %v1123_v26 }
 0x108   :  { %v461_v35 = vpop.permute.xlu1 %460  ;;  %v596_v20 = vpop.permute.xlu0 %595 }
 0x109   :  { %v521_v24 = vmul.f32 %v1141_v23, %v461_v35  ;;  %v552_v42 = vmax.f32 %v536_v7, 0.0 }
 0x10b   :  { %v537_v6 = vadd.f32 %v521_v24, %v437_v15 }
 0x10c   :  { %v469_v11 = vpop.permute.xlu1 %468  ;;  %v601_v12 = vpop.permute.xlu0 %600 }
 0x10d   :  { %v523_v8 = vmul.f32 %v1141_v23, %v469_v11  ;;  %v553_v22 = vmax.f32 %v537_v6, 0.0  ;;  %v666_v15 = vmul.f32 %v601_v12, %v554_v30 }
 0x10f   :  { %v539_v18 = vadd.f32 %v523_v8, %v439_v41  ;;  %v665_v48 = vmul.f32 %v596_v20, %v553_v22 }
 0x110   :  { %v606_v29 = vpop.permute.xlu0 %605 }
 0x111   :  { %v591_v43 = vpop.permute.xlu1 %590  ;;  %v555_v27 = vmax.f32 %v539_v18, 0.0 }
 0x112   :  { %v664_v47 = vmul.f32 %v591_v43, %v552_v42 }
 0x113   :  { %v667_v54 = vmul.f32 %v606_v29, %v555_v27 }
 0x114   :  { %v679_v50 = vadd.f32 %v664_v47, %v663_v46  ;;  %v611_v26 = vpop.permute.xlu0 %610 }
 0x116   :  { %v680_v31 = vadd.f32 %v679_v50, %v665_v48  ;;  %v473_v52 = vpop.permute.xlu1 %472 }
 0x117   :  { %v524_v28 = vmul.f32 %v1141_v23, %v473_v52 }
 0x118   :  { %v681_v63 = vadd.f32 %v680_v31, %v666_v15  ;;  %v616_v33 = vpop.permute.xlu0 %615 }
 0x119   :  { %v540_v41 = vadd.f32 %v524_v28, %v1165_v56 }
 0x11a   :  { %v682_v55 = vadd.f32 %v681_v63, %v667_v54  ;;  %v477_v25 = vpop.permute.xlu1 %476 }
 0x11b   :  { %v556_v9 = vmax.f32 %v540_v41, 0.0  ;;  %v525_v38 = vmul.f32 %v1141_v23, %v477_v25 }
 0x11c   :  { %v621_v21 = vpop.permute.xlu0 %620 }
 0x11d   :  { %v668_v3 = vmul.f32 %v611_v26, %v556_v9  ;;  %v541_v39 = vadd.f32 %v525_v38, %v1172_v49 }
 0x11e   :  { %v481_v60 = vpop.permute.xlu1 %480 }
 0x11f   :  { %v683_v32 = vadd.f32 %v682_v55, %v668_v3  ;;  %v557_v61 = vmax.f32 %v541_v39, 0.0  ;;  %v526_v36 = vmul.f32 %v1141_v23, %v481_v60 }
 0x120   :  { %v626_v1 = vpop.permute.xlu0 %625 }
 0x121   :  { %v669_v0 = vmul.f32 %v616_v33, %v557_v61  ;;  %v542_v14 = vadd.f32 %v526_v36, %v1175_v19 }
 0x122   :  { %v485_v10 = vpop.permute.xlu1 %484 }
 0x123   :  { %v684_v56 = vadd.f32 %v683_v32, %v669_v0  ;;  %v558_v51 = vmax.f32 %v542_v14, 0.0  ;;  %v527_v34 = vmul.f32 %v1141_v23, %v485_v10 }
 0x124   :  { %v631_v12 = vpop.permute.xlu0 %630 }
 0x125   :  { %v670_v2 = vmul.f32 %v621_v21, %v558_v51  ;;  %v543_v44 = vadd.f32 %v527_v34, %v1182_v4 }
 0x126   :  { %v489_v5 = vpop.permute.xlu1 %488 }
 0x127   :  { %v685_v49 = vadd.f32 %v684_v56, %v670_v2  ;;  %v559_v35 = vmax.f32 %v543_v44, 0.0  ;;  %v528_v20 = vmul.f32 %v1141_v23, %v489_v5 }
 0x129   :  { %v671_v24 = vmul.f32 %v626_v1, %v559_v35  ;;  %v544_v7 = vadd.f32 %v528_v20, %v1185_v58  ;;  %v505_v43 = vpop.permute.xlu0 %504 }
 0x12a   :  { %v493_v6 = vpop.permute.xlu1 %492  ;;  %v532_v52 = vmul.f32 %v1141_v23, %v505_v43 }
 0x12b   :  { %v560_v11 = vmax.f32 %v544_v7, 0.0  ;;  %v686_v19 = vadd.f32 %v685_v49, %v671_v24  ;;  %v529_v29 = vmul.f32 %v1141_v23, %v493_v6 }
 0x12d   :  { %v672_v8 = vmul.f32 %v631_v12, %v560_v11  ;;  %v545_v4 = vadd.f32 %v529_v29, %v1194_v37  ;;  %v509_v58 = vpop.permute.xlu0 %508 }
 0x12e   :  { %v497_v53 = vpop.permute.xlu1 %496  ;;  %v533_v37 = vmul.f32 %v1141_v23, %v509_v58 }
 0x12f   :  { %v687_v22 = vadd.f32 %v686_v19, %v672_v8  ;;  %v561_v46 = vmax.f32 %v545_v4, 0.0  ;;  %v530_v48 = vmul.f32 %v1141_v23, %v497_v53 }
 0x131   :  { %v546_v50 = vadd.f32 %v530_v48, %v1197_v40  ;;  %v513_v28 = vpop.permute.xlu0 %512  ;;  %v548_v40 = vadd.f32 %v532_v52, %v1209_v45 }
 0x132   :  { %v501_v18 = vpop.permute.xlu1 %500  ;;  %v534_v61 = vmul.f32 %v1141_v23, %v513_v28 }
 0x133   :  { %v531_v26 = vmul.f32 %v1141_v23, %v501_v18  ;;  %v562_v55 = vmax.f32 %v546_v50, 0.0  ;;  %v564_v36 = vmax.f32 %v548_v40, 0.0 }
 0x135   :  { %v547_v54 = vadd.f32 %v531_v26, %v1206_v16 }
 0x136   :  { %v651_v60 = vpop.permute.xlu0 %650 }
 0x137   :  { %v409_v42 = vpop.permute.xlu1 %408  ;;  %v563_v3 = vmax.f32 %v547_v54, 0.0  ;;  %v676_v21 = vmul.f32 %v651_v60, %v564_v36 }
 0x138   :  { %v433_v15 = vmul.f32 %v1113_v13, %v409_v42 }
 0x13a   :  { %v449_v63 = vadd.f32 %v433_v15, %v1211_v17  ;;  %v704_v35 = vpop.permute.xlu0 %703 }
 0x13b   :  { %v709_v20 = vrot.slane %v704_v35, %v137_v62 }
 0x13c   :  { %v636_v47 = vpop.permute.xlu1 %635  ;;  %v549_v39 = vadd.f32 %v533_v37, %v449_v63 }
 0x13d   :  { %v673_v30 = vmul.f32 %v636_v47, %v561_v46 }
 0x13e   :  { %v565_v0 = vmax.f32 %v549_v39, 0.0 }
 0x13f   :  { %v688_v27 = vadd.f32 %v687_v22, %v673_v30 }
 0x141   :  { %v413_v31 = vpop.permute.xlu1 %412 }
 0x142   :  { %v434_v41 = vmul.f32 %v1113_v13, %v413_v31 }
 0x144   :  { %v450_v9 = vadd.f32 %v434_v41, %v1100_v57 }
 0x146   :  { %v641_v33 = vpop.permute.xlu1 %640  ;;  %v550_v13 = vadd.f32 %v534_v61, %v450_v9 }
 0x147   :  { %v674_v25 = vmul.f32 %v641_v33, %v562_v55 }
 0x148   :  { %v566_v51 = vmax.f32 %v550_v13, 0.0 }
 0x149   :  { %v689_v38 = vadd.f32 %v688_v27, %v674_v25 }
 0x14a   :  { %v646_v32 = vpop.permute.xlu1 %645 }
 0x14b   :  { %v675_v16 = vmul.f32 %v646_v32, %v563_v3 }
 0x14d   :  { %v690_v17 = vadd.f32 %v689_v38, %v675_v16 }
 0x14e   :  { %v656_v14 = vpop.permute.xlu1 %655 }
 0x14f   :  { %v677_v10 = vmul.f32 %v656_v14, %v565_v0  ;;  %v691_v56 = vadd.f32 %v690_v17, %v676_v21 }
 0x151   :  { %v692_v45 = vadd.f32 %v691_v56, %v677_v10 }
 0x152   :  { %v661_v34 = vpop.permute.xlu1 %660 }
 0x153   :  { %v678_v57 = vmul.f32 %v661_v34, %v566_v51 }
 0x155   :  { %v693_v2 = vadd.f32 %v692_v45, %v678_v57 }
 0x157   :  { %v694_v44 = vrot.slane %v693_v2, 4 }
 0x159   :  { %v695_v1 = vadd.f32 %v694_v44, %v693_v2 }
 0x15b   :  { %v696_v5 = vrot.slane %v695_v1, 2 }
 0x15d   :  { %v697_v49 = vadd.f32 %v696_v5, %v695_v1 }
 0x15f   :  { %v698_v23 = vrot.slane %v697_v49, 1 }
 0x161   :  { %v699_v24 = vadd.f32 %v698_v23, %v697_v49 }
 0x163   :  { %v710_v7 = vadd.f32 %v709_v20, %v699_v24 }
 0x165   :  { %v711_v6 = vmul.f32 1.442695, %v710_v7 }
 0x167   :  { %740 = vpow2.f32 %v711_v6 }
 0x171   :  { %v741_v11 = vpop.eup %740 }
 0x172   :  { %v713_v19 = vadd.f32 1.0, %v741_v11 }
 0x174   :  { %742 = vrcp.f32 %v713_v19 }
 0x17e   :  { %v743_v12 = vpop.eup %742 }
 0x17f   :  { %715 = vst [vmem:[%s1253_s5] sm:$0x1] %v743_v12 }

</bundles_post_ra>
